<compile_context>
chip_gen: v6e
topology: v6e:2x2x1
jax: 0.10.0
libtpu: 0.0.40
codegen_flags: <defaults>
</compile_context>

<pallas_src>
import jax
import jax.numpy as jnp
from jax.experimental import pallas as pl
from jax.experimental.pallas import tpu as pltpu

_HIDDEN = 128
_LANE = 128
_SUBLANE = 8


def _round_up(n, m):
    return ((n + m - 1) // m) * m


def franka_ik_mlp_kernel(x_ref, w1_ref, b1_ref, w2_ref, b2_ref, w3_ref, b3_ref, o_ref):
    """One (block_b, ik_dim) tile of the batch through the 3-layer MLP."""
    x = x_ref[...]
    # Layer 1: K = ik_dim (tiny); a single padded MXU push per tile.
    h1 = jnp.dot(x, w1_ref[...], preferred_element_type=jnp.float32) + b1_ref[...]
    # Layers 2/3: 128-wide contractions on the MXU, f32 accumulation.
    h1 = h1.astype(w2_ref.dtype)
    h2 = jnp.dot(h1, w2_ref[...], preferred_element_type=jnp.float32) + b2_ref[...]
    h2 = h2.astype(w3_ref.dtype)
    out = jnp.dot(h2, w3_ref[...], preferred_element_type=jnp.float32) + b3_ref[...]
    # Lane-dense (multiple-of-128) unmasked store; wrapper slices padding off.
    o_ref[...] = out.astype(o_ref.dtype)


def franka_ik_encoder(x, params, ik_dim, ik_feat_dim, *, block_b=512):
    """x: any shape with leading batch dim; flattened to (B, ik_dim) like x.view()."""
    batch = x.shape[0]
    x2d = x.reshape(batch, ik_dim)
    w1, b1, w2, b2, w3, b3 = params

    # --- pad output features to a multiple of the 128-lane width -------------
    out_pad = _round_up(max(ik_feat_dim, _LANE), _LANE)
    if w3.shape[1] != out_pad:
        pad_f = out_pad - w3.shape[1]
        w3 = jnp.pad(w3, ((0, 0), (0, pad_f)))
        b3 = jnp.pad(b3, ((0, 0), (0, pad_f)))

    # --- pad batch to a multiple of the batch tile (>= 8 sublanes) -----------
    tb = min(block_b, _round_up(batch, _SUBLANE))
    tb = _round_up(tb, _SUBLANE)
    b_pad = _round_up(batch, tb)
    if b_pad != batch:
        x2d = jnp.pad(x2d, ((0, b_pad - batch), (0, 0)))

    grid = (b_pad // tb,)
    resident = lambda i: (0, 0)  # weights/biases: same block every grid step

    out = pl.pallas_call(
        franka_ik_mlp_kernel,
        out_shape=jax.ShapeDtypeStruct((b_pad, out_pad), x2d.dtype),
        grid=grid,
        in_specs=[
            pl.BlockSpec((tb, ik_dim), lambda i: (i, 0)),          # x tile
            pl.BlockSpec(w1.shape, resident),                      # w1
            pl.BlockSpec(b1.shape, resident),                      # b1
            pl.BlockSpec(w2.shape, resident),                      # w2
            pl.BlockSpec(b2.shape, resident),                      # b2
            pl.BlockSpec(w3.shape, resident),                      # w3 (padded)
            pl.BlockSpec(b3.shape, resident),                      # b3 (padded)
        ],
        out_specs=pl.BlockSpec((tb, out_pad), lambda i: (i, 0)),
        compiler_params=pltpu.CompilerParams(
            dimension_semantics=("parallel",),
        ),
    )(x2d, w1, b1, w2, b2, w3, b3)

    return out[:batch, :ik_feat_dim]


def init_params(key, ik_dim, ik_feat_dim, hidden=_HIDDEN, dtype=jnp.float32):
    """PyTorch-Linear-style init (uniform(-1/sqrt(fan_in), 1/sqrt(fan_in))).
    Weights returned pre-transposed as (in, out); biases as (1, out)."""
    keys = jax.random.split(key, 6)
    dims = [(ik_dim, hidden), (hidden, hidden), (hidden, ik_feat_dim)]
    params = []
    for i, (fan_in, fan_out) in enumerate(dims):
        bound = 1.0 / (fan_in ** 0.5)
        w = jax.random.uniform(keys[2 * i], (fan_in, fan_out), dtype, -bound, bound)
        b = jax.random.uniform(keys[2 * i + 1], (1, fan_out), dtype, -bound, bound)
        params += [w, b]
    return tuple(params)


def reference_mlp(x, params, ik_dim):
    """Pure-JAX reference for correctness check."""
    x2d = x.reshape(x.shape[0], ik_dim)
    w1, b1, w2, b2, w3, b3 = params
    h = x2d @ w1 + b1
    h = h @ w2 + b2
    return h @ w3 + b3


if __name__ == "__main__":
    # Franka arm: 7-DoF IK vector, small feature dim.
    ik_dim = 7
    ik_feat_dim = 32
    batch = 2

    key = jax.random.PRNGKey(0)
    k_x, k_p = jax.random.split(key)
    x = jax.random.normal(k_x, (batch, ik_dim), jnp.float32)
    params = init_params(k_p, ik_dim, ik_feat_dim)

    out = franka_ik_encoder(x, params, ik_dim, ik_feat_dim)
    out = jax.block_until_ready(out)

    ref = reference_mlp(x, params, ik_dim)
    assert out.shape == (batch, ik_feat_dim), out.shape
    assert jnp.allclose(out, ref, atol=1e-4, rtol=1e-4), "mismatch vs reference"

    # Also exercise the tiled / multi-grid-step path (large batch, not a
    # multiple of the tile) to confirm the pipelined deployment config.
    big_batch = 1030
    xb = jax.random.normal(jax.random.PRNGKey(1), (big_batch, ik_dim), jnp.float32)
    out_b = jax.block_until_ready(
        franka_ik_encoder(xb, params, ik_dim, ik_feat_dim, block_b=512))
    ref_b = reference_mlp(xb, params, ik_dim)
    assert out_b.shape == (big_batch, ik_feat_dim), out_b.shape
    assert jnp.allclose(out_b, ref_b, atol=1e-4, rtol=1e-4), "mismatch (big batch)"

    print("KERNEL_OK")
</pallas_src>

<mosaic_0001>
module attributes {stable_mosaic.version = 11 : i64} {
  func.func @franka_ik_mlp_kernel(%arg0: i32, %arg1: memref<8x7xf32, #tpu.memory_space<vmem>>, %arg2: memref<7x128xf32, #tpu.memory_space<vmem>>, %arg3: memref<1x128xf32, #tpu.memory_space<vmem>>, %arg4: memref<128x128xf32, #tpu.memory_space<vmem>>, %arg5: memref<1x128xf32, #tpu.memory_space<vmem>>, %arg6: memref<128x128xf32, #tpu.memory_space<vmem>>, %arg7: memref<1x128xf32, #tpu.memory_space<vmem>>, %arg8: memref<8x128xf32, #tpu.memory_space<vmem>>) attributes {dimension_semantics = [#tpu.dimension_semantics<parallel>], iteration_bounds = array<i64: 1>, scalar_prefetch = 0 : i64, scratch_operands = 0 : i64, tpu.core_type = #tpu.core_type<tc>, window_params = [{transform_indices = @transform_0, window_bounds = array<i64: 8, 7>}, {pipeline_mode = #tpu.pipeline_mode<synchronous>, transform_indices = @transform_1, window_bounds = array<i64: 7, 128>}, {pipeline_mode = #tpu.pipeline_mode<synchronous>, transform_indices = @transform_2, window_bounds = array<i64: 1, 128>}, {pipeline_mode = #tpu.pipeline_mode<synchronous>, transform_indices = @transform_3, window_bounds = array<i64: 128, 128>}, {pipeline_mode = #tpu.pipeline_mode<synchronous>, transform_indices = @transform_4, window_bounds = array<i64: 1, 128>}, {pipeline_mode = #tpu.pipeline_mode<synchronous>, transform_indices = @transform_5, window_bounds = array<i64: 128, 128>}, {pipeline_mode = #tpu.pipeline_mode<synchronous>, transform_indices = @transform_6, window_bounds = array<i64: 1, 128>}, {transform_indices = @transform_7, window_bounds = array<i64: 8, 128>}]} {
    %c0 = arith.constant 0 : index
    %c0_0 = arith.constant 0 : index
    %0 = vector.load %arg1[%c0, %c0_0] : memref<8x7xf32, #tpu.memory_space<vmem>>, vector<8x7xf32>
    %c0_1 = arith.constant 0 : index
    %c0_2 = arith.constant 0 : index
    %1 = vector.load %arg2[%c0_1, %c0_2] : memref<7x128xf32, #tpu.memory_space<vmem>>, vector<7x128xf32>
    %cst = arith.constant dense<0.000000e+00> : vector<8x128xf32>
    %2 = tpu.matmul %0, %1, %cst {dimension_numbers = #tpu.dot_dimension_numbers<[1], [0], [0], [1], [0, 0, 1, 1], [], []>} : vector<8x7xf32>, vector<7x128xf32>, vector<8x128xf32> -> vector<8x128xf32>
    %c0_3 = arith.constant 0 : index
    %c0_4 = arith.constant 0 : index
    %3 = vector.load %arg3[%c0_3, %c0_4] : memref<1x128xf32, #tpu.memory_space<vmem>>, vector<1x128xf32>
    %4 = vector.broadcast %3 : vector<1x128xf32> to vector<8x128xf32>
    %5 = arith.addf %2, %4 : vector<8x128xf32>
    %c0_5 = arith.constant 0 : index
    %c0_6 = arith.constant 0 : index
    %6 = vector.load %arg4[%c0_5, %c0_6] : memref<128x128xf32, #tpu.memory_space<vmem>>, vector<128x128xf32>
    %cst_7 = arith.constant dense<0.000000e+00> : vector<8x128xf32>
    %7 = tpu.matmul %5, %6, %cst_7 {dimension_numbers = #tpu.dot_dimension_numbers<[1], [0], [0], [1], [0, 0, 1, 1], [], []>} : vector<8x128xf32>, vector<128x128xf32>, vector<8x128xf32> -> vector<8x128xf32>
    %c0_8 = arith.constant 0 : index
    %c0_9 = arith.constant 0 : index
    %8 = vector.load %arg5[%c0_8, %c0_9] : memref<1x128xf32, #tpu.memory_space<vmem>>, vector<1x128xf32>
    %9 = vector.broadcast %8 : vector<1x128xf32> to vector<8x128xf32>
    %10 = arith.addf %7, %9 : vector<8x128xf32>
    %c0_10 = arith.constant 0 : index
    %c0_11 = arith.constant 0 : index
    %11 = vector.load %arg6[%c0_10, %c0_11] : memref<128x128xf32, #tpu.memory_space<vmem>>, vector<128x128xf32>
    %cst_12 = arith.constant dense<0.000000e+00> : vector<8x128xf32>
    %12 = tpu.matmul %10, %11, %cst_12 {dimension_numbers = #tpu.dot_dimension_numbers<[1], [0], [0], [1], [0, 0, 1, 1], [], []>} : vector<8x128xf32>, vector<128x128xf32>, vector<8x128xf32> -> vector<8x128xf32>
    %c0_13 = arith.constant 0 : index
    %c0_14 = arith.constant 0 : index
    %13 = vector.load %arg7[%c0_13, %c0_14] : memref<1x128xf32, #tpu.memory_space<vmem>>, vector<1x128xf32>
    %14 = vector.broadcast %13 : vector<1x128xf32> to vector<8x128xf32>
    %15 = arith.addf %12, %14 : vector<8x128xf32>
    %c0_15 = arith.constant 0 : index
    %c0_16 = arith.constant 0 : index
    %16 = vector.load %arg8[%c0_15, %c0_16] : memref<8x128xf32, #tpu.memory_space<vmem>>, vector<8x128xf32>
    tpu.vector_store %arg8[%c0_15, %c0_16], %15 {strides = array<i32>} : memref<8x128xf32, #tpu.memory_space<vmem>>, vector<8x128xf32>,
    return
  }
  func.func @transform_0(%arg0: i32) -> (i32, i32) {
    %c0_i32 = arith.constant 0 : i32
    %c0_i32_0 = arith.constant 0 : i32
    return %arg0, %c0_i32 : i32, i32
  }
  func.func @transform_1(%arg0: i32) -> (i32, i32) {
    %c0_i32 = arith.constant 0 : i32
    %c0_i32_0 = arith.constant 0 : i32
    %c0_i32_1 = arith.constant 0 : i32
    return %c0_i32, %c0_i32_0 : i32, i32
  }
  func.func @transform_2(%arg0: i32) -> (i32, i32) {
    %c0_i32 = arith.constant 0 : i32
    %c0_i32_0 = arith.constant 0 : i32
    %c0_i32_1 = arith.constant 0 : i32
    return %c0_i32, %c0_i32_0 : i32, i32
  }
  func.func @transform_3(%arg0: i32) -> (i32, i32) {
    %c0_i32 = arith.constant 0 : i32
    %c0_i32_0 = arith.constant 0 : i32
    %c0_i32_1 = arith.constant 0 : i32
    return %c0_i32, %c0_i32_0 : i32, i32
  }
  func.func @transform_4(%arg0: i32) -> (i32, i32) {
    %c0_i32 = arith.constant 0 : i32
    %c0_i32_0 = arith.constant 0 : i32
    %c0_i32_1 = arith.constant 0 : i32
    return %c0_i32, %c0_i32_0 : i32, i32
  }
  func.func @transform_5(%arg0: i32) -> (i32, i32) {
    %c0_i32 = arith.constant 0 : i32
    %c0_i32_0 = arith.constant 0 : i32
    %c0_i32_1 = arith.constant 0 : i32
    return %c0_i32, %c0_i32_0 : i32, i32
  }
  func.func @transform_6(%arg0: i32) -> (i32, i32) {
    %c0_i32 = arith.constant 0 : i32
    %c0_i32_0 = arith.constant 0 : i32
    %c0_i32_1 = arith.constant 0 : i32
    return %c0_i32, %c0_i32_0 : i32, i32
  }
  func.func @transform_7(%arg0: i32) -> (i32, i32) {
    %c0_i32 = arith.constant 0 : i32
    %c0_i32_0 = arith.constant 0 : i32
    return %arg0, %c0_i32 : i32, i32
  }
}

</mosaic_0001>

<bundles_post_ra>
// kernel: tpu_custom_call.1
= control target key start
LH: loop header
LB: loop body
LE: loop exit
PB: predicated region body
PF: predicated region fallthrough
CT: control target
= control target key end

     0   :  { %12 = vsyncpa [#allocation3], 0  ;;  %s714_s0 = inlined_call_operand.hbm [shape: f32[8,7], index: 0, kind: input, shape index: {}]   ;;  %s715_s1 = inlined_call_operand.hbm [shape: f32[7,128], index: 1, kind: input, shape index: {}]   ;;  %s716_s2 = inlined_call_operand.vmem [shape: f32[1,128], index: 2, kind: input, shape index: {}]   ;;  %s717_s3 = inlined_call_operand.hbm [shape: f32[128,128], index: 3, kind: input, shape index: {}]   ;;  %s718_s4 = inlined_call_operand.vmem [shape: f32[1,128], index: 4, kind: input, shape index: {}]   ;;  %s719_s5 = inlined_call_operand.hbm [shape: f32[128,128], index: 5, kind: input, shape index: {}]   ;;  %s720_s6 = inlined_call_operand.vmem [shape: f32[1,128], index: 6, kind: input, shape index: {}]   ;;  %s721_s7 = inlined_call_operand.hbm [shape: f32[8,128], index: 7, kind: output, shape index: {}]  }
   0x1   :  { %13 = vsyncpa [#allocation6], 0 }
   0x2   :  { %14 = vsyncpa [#allocation9], 0 }
   0x3   :  { %15 = vsyncpa [#allocation4], 0  ;;  %s602_s24 = smov [#allocation5]   ;;  %s603_s26 = smov [#allocation2]  }
   0x4   :  { %s32_s25 = sshll.u32 %s602_s24, 4  ;;  %s22_s27 = sshll.u32 %s603_s26, 4  ;;  %s33_s25 = int_to_ptr.vmem [resolvable:$true] %s32_s25  ;;  %s23_s27 = int_to_ptr.vmem [resolvable:$true] %s22_s27 }
   0x5   :  { %s502_s28 = scalar_lea.vmem %s33_s25, 128  ;;  %p507_p1 = scmp.lt.s32.totalorder %s33_s25, %s33_s25 }
   0x6   :  { %p503_p0 = scmp.ne.s32.totalorder %s33_s25, %s502_s28  ;;  %p508_p2 = scmp.lt.s32.totalorder %s502_s28, %s502_s28 }
   0x8   :  { %p509_p3 = por %p508_p2, %p507_p1 }
   0xa   :  { %p510_p4 = pnand %p509_p3, %p503_p0 }
   0xc   :  { %513 = shalt.err (!%p510_p4)
}
   0xd   :  { %35 = dma.hbm_to_vmem [thread:$0]  %s715_s1, 128, %s33_s25, [#allocation6]  }
   0xe   :  { %s522_s8 = scalar_lea.vmem %s23_s27, 128  ;;  %p527_p6 = scmp.lt.s32.totalorder %s23_s27, %s23_s27 }
   0xf   :  { %p523_p5 = scmp.ne.s32.totalorder %s23_s27, %s522_s8  ;;  %p528_p7 = scmp.lt.s32.totalorder %s522_s8, %s522_s8 }
  0x11   :  { %p529_p8 = por %p528_p7, %p527_p6 }
  0x13   :  { %p530_p9 = pnand %p529_p8, %p523_p5 }
  0x15   :  { %533 = shalt.err (!%p530_p9)
}
  0x16   :  { %25 = dma.hbm_to_vmem [thread:$0]  %s714_s0, 128, %s23_s27, [#allocation3]  }
  0x17   :  { %s604_s11 = smov [#allocation7]  }
  0x18   :  { %s43_s12 = sshll.u32 %s604_s11, 4  ;;  %s44_s12 = int_to_ptr.vmem [resolvable:$true] %s43_s12 }
  0x19   :  { %s542_s13 = scalar_lea.vmem %s44_s12, 2048  ;;  %p547_p11 = scmp.lt.s32.totalorder %s44_s12, %s44_s12 }
  0x1a   :  { %p543_p10 = scmp.ne.s32.totalorder %s44_s12, %s542_s13  ;;  %p548_p12 = scmp.lt.s32.totalorder %s542_s13, %s542_s13 }
  0x1c   :  { %p549_p13 = por %p548_p12, %p547_p11 }
  0x1e   :  { %p550_p0 = pnand %p549_p13, %p543_p10 }
  0x20   :  { %553 = shalt.err (!%p550_p0)
}
  0x21   :  { %s605_s1 = smov 128   ;;  %s606_s14 = smov 8  }
  0x22   :  { %49 = dma.hbm_to_vmem [thread:$0]  %s717_s3, 2048, %s44_s12, [#allocation6], %s605_s1, %s605_s1, %s606_s14  }
  0x23   :  { %s607_s17 = smov [#allocation8]  }
  0x24   :  { %s57_s18 = sshll.u32 %s607_s17, 4  ;;  %s58_s18 = int_to_ptr.vmem [resolvable:$true] %s57_s18 }
  0x25   :  { %s562_s0 = scalar_lea.vmem %s58_s18, 2048  ;;  %p567_p2 = scmp.lt.s32.totalorder %s58_s18, %s58_s18 }
  0x26   :  { %p563_p1 = scmp.ne.s32.totalorder %s58_s18, %s562_s0  ;;  %p568_p3 = scmp.lt.s32.totalorder %s562_s0, %s562_s0 }
  0x28   :  { %p569_p4 = por %p568_p3, %p567_p2 }
  0x2a   :  { %p570_p5 = pnand %p569_p4, %p563_p1 }
  0x2c   :  { %573 = shalt.err (!%p570_p5)
}
  0x2d   :  { %63 = dma.hbm_to_vmem [thread:$0]  %s719_s5, 2048, %s58_s18, [#allocation9], %s605_s1, %s605_s1, %s606_s14  }
  0x2e   :  { %594 = dma.done.wait [#allocation3], 128  }
  0x2f   :  { %595 = vsyncadd [#allocation3], 4294967168 }
  0x30   :  { %596 = dma.done.wait [#allocation6], 2176  }
  0x31   :  { %597 = vsyncadd [#allocation6], 4294965120 }
  0x32   :  { %598 = dma.done.wait [#allocation9], 2048  }
  0x33   :  { %599 = vsyncadd [#allocation9], 4294965248  ;;  %v608_v0 = vmov 0.0   ;;  %vm609_vm0 = vmmov 0   ;;  %vm91_vm1 = vcmask 1046528   ;;  %vm87_vm2 = vcmask 56320  }
  0x34   :  { %410 = vmatprep.subr.mxu0 %v608_v0  ;;  %412 = vmatprep.mubr.msk.f32.mxu0 %vm609_vm0, %v608_v0  ;;  %v79_v1 = vld [vmem:[#allocation5] sm:$0x7f]  ;;  %v78_v2 = vld [vmem:[#allocation2] sm:$0xff]  ;;  %v178_v5 = vld [vmem:[#allocation7 + $0x68] sm:$0xff]  ;;  %s610_s24 = smov [#allocation10]  }
  0x35   :  { %415 = vmatprep.subr.mxu1 %v608_v0  ;;  %447 = vmatprep.mubr.msk.f32.mxu1 %vm609_vm0, %v608_v0  ;;  %v180_v3 = vld [vmem:[#allocation7 + $0x78] sm:$0xff]  ;;  %v179_v4 = vld [vmem:[#allocation7 + $0x70] sm:$0xff]  ;;  %v177_v6 = vld [vmem:[#allocation7 + $0x60] sm:$0xff]  ;;  %s358_s25 = sshll.u32 %s610_s24, 4  ;;  %s359_s25 = int_to_ptr.vmem [resolvable:$true] %s358_s25 }
  0x36   :  { %411 = vmatpush3.msk.msra.mxu0 %vm91_vm1, %v79_v1  ;;  %416 = vmatpush3.msra.mxu1 %v180_v3  ;;  %v176_v7 = vld [vmem:[#allocation7 + $0x58] sm:$0xff]  ;;  %v175_v8 = vld [vmem:[#allocation7 + $0x50] sm:$0xff]  ;;  %v174_v9 = vld [vmem:[#allocation7 + $0x48] sm:$0xff]  ;;  %s574_s26 = scalar_lea.vmem %s359_s25, 128  ;;  %p579_p7 = scmp.lt.s32.totalorder %s359_s25, %s359_s25 }
  0x37   :  { %413 = vmatmul.mubr.msk.f32.vlgmr.msra.gmra.mxu0 %vm87_vm2, %v78_v2  ;;  %417 = vmatprep.subr.mxu1 %v608_v0  ;;  %v173_v10 = vld [vmem:[#allocation7 + $0x40] sm:$0xff]  ;;  %v172_v11 = vld [vmem:[#allocation7 + $0x38] sm:$0xff]  ;;  %v171_v12 = vld [vmem:[#allocation7 + $0x30] sm:$0xff]  ;;  %p575_p6 = scmp.ne.s32.totalorder %s359_s25, %s574_s26  ;;  %p580_p8 = scmp.lt.s32.totalorder %s574_s26, %s574_s26 }
  0x38   :  { %418 = vmatpush3.msra.mxu1 %v179_v4  ;;  %450 = vmatprep.subr.mxu0 %v608_v0  ;;  %v170_v13 = vld [vmem:[#allocation7 + $0x28] sm:$0xff]  ;;  %v169_v14 = vld [vmem:[#allocation7 + $0x20] sm:$0xff]  ;;  %v168_v15 = vld [vmem:[#allocation7 + $0x18] sm:$0xff] }
  0x39   :  { %419 = vmatprep.subr.mxu1 %v608_v0  ;;  %482 = vmatprep.mubr.msk.f32.mxu0 %vm609_vm0, %v608_v0  ;;  %v167_v16 = vld [vmem:[#allocation7 + $0x10] sm:$0xff]  ;;  %v166_v17 = vld [vmem:[#allocation7 + $0x8] sm:$0xff]  ;;  %v165_v18 = vld [vmem:[#allocation7] sm:$0xff]  ;;  %p581_p9 = por %p580_p8, %p579_p7 }
  0x3a   :  { %420 = vmatpush3.msra.mxu1 %v178_v5  ;;  %v273_v19 = vld [vmem:[#allocation8 + $0x78] sm:$0xff]  ;;  %v272_v20 = vld [vmem:[#allocation8 + $0x70] sm:$0xff]  ;;  %v271_v21 = vld [vmem:[#allocation8 + $0x68] sm:$0xff] }
  0x3b   :  { %421 = vmatprep.subr.mxu1 %v608_v0  ;;  %451 = vmatpush3.msra.mxu0 %v273_v19  ;;  %v270_v22 = vld [vmem:[#allocation8 + $0x60] sm:$0xff]  ;;  %v269_v23 = vld [vmem:[#allocation8 + $0x58] sm:$0xff]  ;;  %v268_v24 = vld [vmem:[#allocation8 + $0x50] sm:$0xff]  ;;  %p582_p10 = pnand %p581_p9, %p575_p6 }
  0x3c   :  { %422 = vmatpush3.msra.mxu1 %v177_v6  ;;  %452 = vmatprep.subr.mxu0 %v608_v0  ;;  %v267_v25 = vld [vmem:[#allocation8 + $0x48] sm:$0xff]  ;;  %v266_v26 = vld [vmem:[#allocation8 + $0x40] sm:$0xff]  ;;  %v265_v27 = vld [vmem:[#allocation8 + $0x38] sm:$0xff] }
  0x3d   :  { %423 = vmatprep.subr.mxu1 %v608_v0  ;;  %453 = vmatpush3.msra.mxu0 %v272_v20  ;;  %v264_v28 = vld [vmem:[#allocation8 + $0x30] sm:$0xff]  ;;  %v263_v29 = vld [vmem:[#allocation8 + $0x28] sm:$0xff]  ;;  %v262_v30 = vld [vmem:[#allocation8 + $0x20] sm:$0xff] }
  0x3e   :  { %424 = vmatpush3.msra.mxu1 %v176_v7  ;;  %454 = vmatprep.subr.mxu0 %v608_v0  ;;  %v261_v31 = vld [vmem:[#allocation8 + $0x18] sm:$0xff]  ;;  %v260_v32 = vld [vmem:[#allocation8 + $0x10] sm:$0xff]  ;;  %v259_v37 = vld [vmem:[#allocation8 + $0x8] sm:$0xff] }
  0x3f   :  { %425 = vmatprep.subr.mxu1 %v608_v0  ;;  %455 = vmatpush3.msra.mxu0 %v271_v21  ;;  %v369_v33 = vld [vmem:[%s716_s2] ss:$0 sm:$0xff]  ;;  %v258_v38 = vld [vmem:[#allocation8] sm:$0xff] }
  0x40   :  { %426 = vmatpush3.msra.mxu1 %v175_v8  ;;  %456 = vmatprep.subr.mxu0 %v608_v0  ;;  %v372_v39 = vld [vmem:[%s718_s4] ss:$0 sm:$0xff] }
  0x41   :  { %427 = vmatprep.subr.mxu1 %v608_v0  ;;  %457 = vmatpush3.msra.mxu0 %v270_v22  ;;  %v373_v43 = vld [vmem:[%s720_s6] ss:$0 sm:$0xff] }
  0x42   :  { %428 = vmatpush3.msra.mxu1 %v174_v9  ;;  %458 = vmatprep.subr.mxu0 %v608_v0 }
  0x43   :  { %429 = vmatprep.subr.mxu1 %v608_v0  ;;  %459 = vmatpush3.msra.mxu0 %v269_v23 }
  0x44   :  { %430 = vmatpush3.msra.mxu1 %v173_v10  ;;  %460 = vmatprep.subr.mxu0 %v608_v0 }
  0x45   :  { %431 = vmatprep.subr.mxu1 %v608_v0  ;;  %461 = vmatpush3.msra.mxu0 %v268_v24 }
  0x46   :  { %432 = vmatpush3.msra.mxu1 %v172_v11  ;;  %462 = vmatprep.subr.mxu0 %v608_v0 }
  0x47   :  { %433 = vmatprep.subr.mxu1 %v608_v0  ;;  %463 = vmatpush3.msra.mxu0 %v267_v25 }
  0x48   :  { %434 = vmatpush3.msra.mxu1 %v171_v12  ;;  %464 = vmatprep.subr.mxu0 %v608_v0 }
  0x49   :  { %435 = vmatprep.subr.mxu1 %v608_v0  ;;  %465 = vmatpush3.msra.mxu0 %v266_v26 }
  0x4a   :  { %436 = vmatpush3.msra.mxu1 %v170_v13  ;;  %466 = vmatprep.subr.mxu0 %v608_v0 }
  0x4b   :  { %437 = vmatprep.subr.mxu1 %v608_v0  ;;  %467 = vmatpush3.msra.mxu0 %v265_v27 }
  0x4c   :  { %438 = vmatpush3.msra.mxu1 %v169_v14  ;;  %468 = vmatprep.subr.mxu0 %v608_v0 }
  0x4d   :  { %439 = vmatprep.subr.mxu1 %v608_v0  ;;  %469 = vmatpush3.msra.mxu0 %v264_v28 }
  0x4e   :  { %440 = vmatpush3.msra.mxu1 %v168_v15  ;;  %470 = vmatprep.subr.mxu0 %v608_v0 }
  0x4f   :  { %441 = vmatprep.subr.mxu1 %v608_v0  ;;  %471 = vmatpush3.msra.mxu0 %v263_v29 }
  0x50   :  { %442 = vmatpush3.msra.mxu1 %v167_v16  ;;  %472 = vmatprep.subr.mxu0 %v608_v0 }
  0x51   :  { %443 = vmatprep.subr.mxu1 %v608_v0  ;;  %473 = vmatpush3.msra.mxu0 %v262_v30 }
  0x52   :  { %444 = vmatpush3.msra.mxu1 %v166_v17  ;;  %474 = vmatprep.subr.mxu0 %v608_v0 }
  0x53   :  { %445 = vmatprep.subr.mxu1 %v608_v0  ;;  %475 = vmatpush3.msra.mxu0 %v261_v31 }
  0x54   :  { %446 = vmatpush3.msra.mxu1 %v165_v18  ;;  %476 = vmatprep.subr.mxu0 %v608_v0 }
  0x55   :  { %477 = vmatpush3.msra.mxu0 %v260_v32 }
  0x56   :  { %478 = vmatprep.subr.mxu0 %v608_v0 }
  0x57   :  { %479 = vmatpush3.msra.mxu0 %v259_v37 }
  0x58   :  { %480 = vmatprep.subr.mxu0 %v608_v0 }
  0x59   :  { %481 = vmatpush3.msra.mxu0 %v258_v38 }
  0xf7   :  { %v161_v34 = vpop.f32.mrf.mxu0 }
  0xf8   :  { %v162_v35 = vadd.f32 %v369_v33, %v161_v34 }
  0xf9   :  { %v414_v36 = vpop.f32.mrf.mxu0 }
  0xfa   :  { %448 = vmatmul.mubr.f32.vlgmr.msra.gmra.mxu1 %v162_v35 }
 0x1ba   :  { %v254_v40 = vpop.f32.mrf.mxu1 }
 0x1bb   :  { %v255_v41 = vadd.f32 %v372_v39, %v254_v40 }
 0x1bc   :  { %v449_v42 = vpop.f32.mrf.mxu1 }
 0x1bd   :  { %483 = vmatmul.mubr.f32.vlgmr.msra.gmra.mxu0 %v255_v41 }
 0x27d   :  { %v347_v44 = vpop.f32.mrf.mxu0 }
 0x27e   :  { %v348_v45 = vadd.f32 %v373_v43, %v347_v44 }
 0x27f   :  { %v484_v46 = vpop.f32.mrf.mxu0 }
 0x280   :  { %351 = vst [vmem:[#allocation10] sm:$0xff] %v348_v45 }
 0x281   :  { %585 = shalt.err (!%p582_p10)
}
 0x282   :  { %361 = dma.vmem_to_hbm [thread:$0]  %s359_s25, 128, %s721_s7, [#allocation4]  }
 0x283   :  { %600 = dma.done.wait [#allocation4], 128  }
 0x284   :  { %601 = vsyncadd [#allocation4], 4294967168 }
 0x285   :  { %365 = vsyncpa [#allocation3], 1 }
 0x286   :  { %366 = vsyncpa [#allocation6], 1 }
 0x287   :  { %367 = vsyncpa [#allocation9], 1 }
 0x288   :  { %368 = vsyncpa [#allocation4], 1 }

</bundles_post_ra>
